<compile_context>
chip_gen: v7x
topology: tpu7x:2x2x1
jax: 0.10.0
libtpu: 0.0.40
codegen_flags: <defaults>
</compile_context>

<pallas_src>
import functools

import jax
import jax.numpy as jnp
from jax import lax
from jax.experimental import pallas as pl
from jax.experimental.pallas import tpu as pltpu


LANES = 128   # lane width
SUB = 8       # f32 sublanes per vreg


# -----------------------------------------------------------------------------
# Pallas kernel: ReLU -> accumulate spatial sum -> (final step) matmul + bias
# -----------------------------------------------------------------------------
def _make_head_kernel(inv_hw, bt, t, c, sublane_parallel):
    def kernel(x_ref, w_ref, b_ref, logits_ref, feat_ref, acc_ref):
        # x_ref:      (Bt, T, C)          pre-ReLU feature tile
        # w_ref:      (C, Kp)             classifier weight (transposed, zero-padded lanes)
        # b_ref:      (1, Kp)             classifier bias (zero-padded)
        # logits_ref: (Bt, 1, Kp)         per-batch-tile logits (lane-dense)
        # feat_ref:   (Bt, T, C)          ReLU'd feature tile (aliases the input HBM buffer)
        # acc_ref:    (Bt, 8, C) or (Bt, C) f32 pooled-sum accumulator (VMEM scratch)
        s = pl.program_id(1)

        @pl.when(s == 0)
        def _init():
            acc_ref[...] = jnp.zeros_like(acc_ref)

        x = x_ref[...]
        xr = jnp.maximum(x, 0.0)                 # F.relu(x, inplace=True)
        feat_ref[...] = xr                       # lane-dense (C = 8*128) writeback

        if sublane_parallel:
            # Pure VPU partial sums: element-wise adds of whole (8 x 128) vreg tiles
            # across groups of 8 sublane rows.  The cross-sublane XLU reduce is
            # deferred to the single finalize step below.
            acc_ref[...] += xr.reshape(bt, t // SUB, SUB, c).sum(axis=1)
        else:
            acc_ref[...] += jnp.sum(xr, axis=1)  # (Bt, C) partial spatial sum

        @pl.when(s == pl.num_programs(1) - 1)
        def _finalize():
            acc = acc_ref[...]
            if sublane_parallel:
                acc = acc.sum(axis=1)            # one cross-sublane reduce per batch tile
            pooled = acc * inv_hw                # global avg pool, divisor = true H*W
            logits = jnp.dot(pooled, w_ref[...],
                             preferred_element_type=jnp.float32)   # (Bt, Kp) on the MXU
            out = (logits + b_ref[...]).astype(logits_ref.dtype)
            logits_ref[...] = out.reshape(logits_ref.shape)

    return kernel


def _pick_batch_tile(n, max_bt=8):
    """Largest divisor of n (<= max_bt) that keeps >= 2 parallel grid entries.

    Keeping n//bt >= 2 lets the parallel batch axis shard across both v7x
    TensorCores; on v5e/v6e (single TC) the constraint is harmless.
    """
    # TODO(synk): for N == 1 on v7x the spatial axis could be split into two parallel
    # halves (partial pooled sums combined in the wrapper) to use both TensorCores.
    best = 1
    for bt in range(2, min(n, max_bt) + 1):
        if n % bt == 0 and n // bt >= 2:
            best = bt
    return best


def _pick_spatial_tile(hw, c, bt=1, itemsize=4, target_bytes=2 * 1024 * 1024):
    """Largest multiple-of-8 divisor of hw whose (Bt, T, C) tile stays <= ~2 MB.

    Keeps the double-buffered input + output feature blocks (plus ~1 MB of resident
    classifier weights) comfortably inside the scoped VMEM defaults on all of
    v5e (16 MiB), v6e (32 MiB) and v7x (32 MiB default / 64 MiB physical).
    """
    max_rows = max(SUB, target_bytes // (bt * c * itemsize))
    best = None
    t = SUB
    while t <= min(hw, max_rows):
        if hw % t == 0:
            best = t
        t += SUB
    # Fall back to the full spatial extent (block == full array dim is always legal,
    # e.g. the real densenet 7*7=49 case).
    return best if best is not None else hw


def densenet_head(feature_nhwc, cls_w, cls_b, *, spatial_tile=None, batch_tile=None):
    """feature_nhwc: (N, H, W, C) f32; cls_w: (K, C); cls_b: (K,)."""
    N, H, W, C = feature_nhwc.shape
    K = cls_w.shape[0]
    HW = H * W

    # Pad the classifier out-dim to a full lane width (128) -> unmasked lane-dense
    # stores and a clean (., 128) MXU output tile.  Sliced back to K below.
    Kp = max(LANES, ((K + LANES - 1) // LANES) * LANES)
    w_t = jnp.zeros((C, Kp), jnp.float32).at[:, :K].set(
        jnp.transpose(cls_w, (1, 0)).astype(jnp.float32))
    b_p = jnp.zeros((1, Kp), jnp.float32).at[:, :K].set(
        cls_b.reshape(1, K).astype(jnp.float32))

    # Flatten spatial dims; channels stay whole as the minor (lane) dim.
    feat_flat = feature_nhwc.reshape(N, HW, C)

    Bt = batch_tile if batch_tile is not None else _pick_batch_tile(N)
    assert N % Bt == 0, (N, Bt)
    T = spatial_tile if spatial_tile is not None else _pick_spatial_tile(HW, C, Bt)
    assert HW % T == 0 and (T % SUB == 0 or T == HW), (HW, T)
    S = HW // T
    NB = N // Bt

    sublane_parallel = (T % SUB == 0)
    acc_shape = (Bt, SUB, C) if sublane_parallel else (Bt, C)

    kernel = _make_head_kernel(1.0 / float(HW), Bt, T, C, sublane_parallel)

    grid_spec = pltpu.PrefetchScalarGridSpec(
        num_scalar_prefetch=0,
        grid=(NB, S),                                        # spatial reduction axis last
        in_specs=[
            pl.BlockSpec((Bt, T, C), lambda n, s: (n, s, 0)),
            pl.BlockSpec((C, Kp), lambda n, s: (0, 0)),
            pl.BlockSpec((1, Kp), lambda n, s: (0, 0)),
        ],
        out_specs=[
            pl.BlockSpec((Bt, 1, Kp), lambda n, s: (n, 0, 0)),
            pl.BlockSpec((Bt, T, C), lambda n, s: (n, s, 0)),
        ],
        # Per-core scratch; safe because only the batch axis is "parallel" so each core
        # runs complete spatial loops per batch block.
        scratch_shapes=[pltpu.VMEM(acc_shape, jnp.float32)],
    )

    logits_p, feat_relu_flat = pl.pallas_call(
        kernel,
        out_shape=(
            jax.ShapeDtypeStruct((N, 1, Kp), jnp.float32),
            jax.ShapeDtypeStruct((N, HW, C), jnp.float32),
        ),
        grid_spec=grid_spec,
        # F.relu(inplace=True): the ReLU'd feature output reuses the input HBM buffer.
        # Safe because in/out feature blocks share identical shapes + index_maps
        # (one-to-one read-before-write tile mapping).
        input_output_aliases={0: 1},
        compiler_params=pltpu.CompilerParams(
            dimension_semantics=("parallel", "arbitrary"),
        ),
    )(feat_flat, w_t, b_p)

    logits = logits_p[:, 0, :K]
    feat_relu = feat_relu_flat.reshape(N, H, W, C)
    return logits, feat_relu


# -----------------------------------------------------------------------------
# Stand-in feature backbone (plain-JAX glue), output channels = 1024 (densenet121)
# -----------------------------------------------------------------------------
def feature_backbone(x_nhwc, params):
    # conv 3x3, stride 8, pad 1 (3 -> 1024 channels), then affine norm (like norm5).
    # The real densenet121 feature tower ends with a BatchNorm and NO ReLU, which is
    # why forward() applies F.relu afterwards; we mirror that.
    y = lax.conv_general_dilated(
        x_nhwc, params["conv_w"],
        window_strides=(8, 8),
        padding=[(1, 1), (1, 1)],
        dimension_numbers=("NHWC", "HWIO", "NHWC"),
    )
    return y * params["norm_gamma"] + params["norm_beta"]


def init_params(key, num_class=5, indim=1024):
    k1, k2, k3 = jax.random.split(key, 3)
    conv_w = jax.random.normal(k1, (3, 3, 3, indim), jnp.float32) * 0.1   # HWIO
    cls_w = jax.random.normal(k2, (num_class, indim), jnp.float32) * (1.0 / jnp.sqrt(indim))
    cls_b = jax.random.normal(k3, (num_class,), jnp.float32) * 0.01
    return {
        "conv_w": conv_w,
        "norm_gamma": jnp.ones((indim,), jnp.float32),
        "norm_beta": jnp.zeros((indim,), jnp.float32),
        "cls_w": cls_w,
        "cls_b": cls_b,
    }


@functools.partial(jax.jit,
                   static_argnames=("spatial_tile", "batch_tile", "channels_first_feature"))
def densenet_forward(x_nchw, params, spatial_tile=None, batch_tile=None,
                     channels_first_feature=False):
    """Mirrors DenseNet.forward; x in NCHW (PyTorch convention).

    The ReLU'd feature map is returned channels-LAST (NHWC) by default to avoid a
    full-HBM-round-trip transpose of the largest tensor; pass
    channels_first_feature=True to recover the exact PyTorch NCHW layout.
    """
    x_nhwc = jnp.transpose(x_nchw, (0, 2, 3, 1))                  # NCHW -> NHWC
    feat = feature_backbone(x_nhwc, params)                       # (N, H', W', 1024)
    logits, feat_relu = densenet_head(
        feat, params["cls_w"], params["cls_b"],
        spatial_tile=spatial_tile, batch_tile=batch_tile)
    if channels_first_feature:
        feat_relu = jnp.transpose(feat_relu, (0, 3, 1, 2))        # back to NCHW (extra HBM pass)
    # x.detach() has no grad-graph meaning here; stop_gradient is the analogue.
    return logits, lax.stop_gradient(feat_relu), None


if __name__ == "__main__":
    key = jax.random.PRNGKey(0)
    k_in, k_par = jax.random.split(key)

    N, C_in, H_in, W_in = 4, 3, 32, 32
    num_class = 5

    x = jax.random.normal(k_in, (N, C_in, H_in, W_in), jnp.float32)   # NCHW, like torch
    params = init_params(k_par, num_class=num_class, indim=1024)

    # Pure-JAX reference for the whole forward.
    x_nhwc = jnp.transpose(x, (0, 2, 3, 1))
    f = feature_backbone(x_nhwc, params)
    f_relu = jnp.maximum(f, 0.0)                                       # (N, 4, 4, 1024)
    ref_logits = jnp.mean(f_relu, axis=(1, 2)) @ params["cls_w"].T + params["cls_b"]
    ref_feat_nhwc = f_relu
    ref_feat_nchw = jnp.transpose(f_relu, (0, 3, 1, 2))

    # Default tiling: Bt=2 batch tile, single spatial block at this small size.
    logits, feat, none_out = densenet_forward(x, params)
    jax.block_until_ready(logits)
    jax.block_until_ready(feat)

    assert logits.shape == (N, num_class)
    assert feat.shape == (N, 4, 4, 1024)                   # channels-last feature map
    assert none_out is None
    assert bool(jnp.all(feat >= 0))                        # ReLU'd feature map
    assert bool(jnp.allclose(logits, ref_logits, atol=5e-4, rtol=5e-4))
    assert bool(jnp.allclose(feat, ref_feat_nhwc, atol=1e-5, rtol=1e-5))

    # Force multiple spatial tiles (H'*W'=16 -> 2 steps of 8), Bt=1, and the PyTorch
    # NCHW feature layout; exercises the accumulator init / accumulate / finalize path.
    logits2, feat2, _ = densenet_forward(x, params, spatial_tile=8, batch_tile=1,
                                         channels_first_feature=True)
    jax.block_until_ready(logits2)
    jax.block_until_ready(feat2)
    assert feat2.shape == (N, 1024, 4, 4)
    assert bool(jnp.allclose(logits2, ref_logits, atol=5e-4, rtol=5e-4))
    assert bool(jnp.allclose(feat2, ref_feat_nchw, atol=1e-5, rtol=1e-5))

    print("KERNEL_OK")
</pallas_src>

<mosaic_0001>
module attributes {stable_mosaic.version = 11 : i64} {
  func.func @kernel(%arg0: i32, %arg1: i32, %arg2: memref<2x16x1024xf32, #tpu.memory_space<vmem>>, %arg3: memref<1024x128xf32, #tpu.memory_space<vmem>>, %arg4: memref<1x128xf32, #tpu.memory_space<vmem>>, %arg5: memref<2x1x128xf32, #tpu.memory_space<vmem>>, %arg6: memref<2x16x1024xf32, #tpu.memory_space<vmem>>, %arg7: memref<2x8x1024xf32, #tpu.memory_space<vmem>>) attributes {dimension_semantics = [#tpu.dimension_semantics<parallel>, #tpu.dimension_semantics<arbitrary>], iteration_bounds = array<i64: 2, 1>, scalar_prefetch = 0 : i64, scratch_operands = 1 : i64, tpu.core_type = #tpu.core_type<tc>, window_params = [{transform_indices = @transform_0, window_bounds = array<i64: 2, 16, 1024>}, {pipeline_mode = #tpu.pipeline_mode<synchronous>, transform_indices = @transform_1, window_bounds = array<i64: 1024, 128>}, {pipeline_mode = #tpu.pipeline_mode<synchronous>, transform_indices = @transform_2, window_bounds = array<i64: 1, 128>}, {transform_indices = @transform_3, window_bounds = array<i64: 2, 1, 128>}, {transform_indices = @transform_4, window_bounds = array<i64: 2, 16, 1024>}]} {
    %c0_i32 = arith.constant 0 : i32
    %0 = arith.cmpi eq, %arg1, %c0_i32 : i32
    %1 = arith.extui %0 : i1 to i32
    %c0_i32_0 = arith.constant 0 : i32
    %2 = arith.cmpi ne, %1, %c0_i32_0 : i32
    scf.if %2 {
      %cst_15 = arith.constant 0.000000e+00 : f32
      %15 = vector.broadcast %cst_15 : f32 to vector<2x8x1024xf32>
      %c0_16 = arith.constant 0 : index
      %c0_17 = arith.constant 0 : index
      %c0_18 = arith.constant 0 : index
      %16 = vector.load %arg7[%c0_16, %c0_17, %c0_18] : memref<2x8x1024xf32, #tpu.memory_space<vmem>>, vector<2x8x1024xf32>
      tpu.vector_store %arg7[%c0_16, %c0_17, %c0_18], %15 {strides = array<i32>} : memref<2x8x1024xf32, #tpu.memory_space<vmem>>, vector<2x8x1024xf32>,
    } else {
    }
    %c0 = arith.constant 0 : index
    %c0_1 = arith.constant 0 : index
    %c0_2 = arith.constant 0 : index
    %3 = vector.load %arg2[%c0, %c0_1, %c0_2] : memref<2x16x1024xf32, #tpu.memory_space<vmem>>, vector<2x16x1024xf32>
    %cst = arith.constant 0.000000e+00 : f32
    %4 = vector.broadcast %cst : f32 to vector<2x16x1024xf32>
    %5 = arith.maximumf %3, %4 : vector<2x16x1024xf32>
    %c0_3 = arith.constant 0 : index
    %c0_4 = arith.constant 0 : index
    %c0_5 = arith.constant 0 : index
    %6 = vector.load %arg6[%c0_3, %c0_4, %c0_5] : memref<2x16x1024xf32, #tpu.memory_space<vmem>>, vector<2x16x1024xf32>
    tpu.vector_store %arg6[%c0_3, %c0_4, %c0_5], %5 {strides = array<i32>} : memref<2x16x1024xf32, #tpu.memory_space<vmem>>, vector<2x16x1024xf32>,
    %c0_6 = arith.constant 0 : index
    %c0_7 = arith.constant 0 : index
    %c0_8 = arith.constant 0 : index
    %7 = vector.load %arg7[%c0_6, %c0_7, %c0_8] : memref<2x8x1024xf32, #tpu.memory_space<vmem>>, vector<2x8x1024xf32>
    %8 = vector.shape_cast %5 : vector<2x16x1024xf32> to vector<2x2x8x1024xf32>
    %cst_9 = arith.constant dense<0.000000e+00> : vector<2x8x1024xf32>
    %9 = vector.multi_reduction <add>, %8, %cst_9 [1] : vector<2x2x8x1024xf32> to vector<2x8x1024xf32>
    %10 = arith.addf %7, %9 : vector<2x8x1024xf32>
    %c0_10 = arith.constant 0 : index
    %c0_11 = arith.constant 0 : index
    %c0_12 = arith.constant 0 : index
    %11 = vector.load %arg7[%c0_10, %c0_11, %c0_12] : memref<2x8x1024xf32, #tpu.memory_space<vmem>>, vector<2x8x1024xf32>
    tpu.vector_store %arg7[%c0_10, %c0_11, %c0_12], %10 {strides = array<i32>} : memref<2x8x1024xf32, #tpu.memory_space<vmem>>, vector<2x8x1024xf32>,
    %c0_i32_13 = arith.constant 0 : i32
    %12 = arith.cmpi eq, %arg1, %c0_i32_13 : i32
    %13 = arith.extui %12 : i1 to i32
    %c0_i32_14 = arith.constant 0 : i32
    %14 = arith.cmpi ne, %13, %c0_i32_14 : i32
    scf.if %14 {
      %c0_15 = arith.constant 0 : index
      %c0_16 = arith.constant 0 : index
      %c0_17 = arith.constant 0 : index
      %15 = vector.load %arg7[%c0_15, %c0_16, %c0_17] : memref<2x8x1024xf32, #tpu.memory_space<vmem>>, vector<2x8x1024xf32>
      %cst_18 = arith.constant dense<0.000000e+00> : vector<2x1024xf32>
      %16 = vector.multi_reduction <add>, %15, %cst_18 [1] : vector<2x8x1024xf32> to vector<2x1024xf32>
      %cst_19 = arith.constant 6.250000e-02 : f32
      %17 = vector.broadcast %cst_19 : f32 to vector<2x1024xf32>
      %18 = arith.mulf %16, %17 : vector<2x1024xf32>
      %c0_20 = arith.constant 0 : index
      %c0_21 = arith.constant 0 : index
      %19 = vector.load %arg3[%c0_20, %c0_21] : memref<1024x128xf32, #tpu.memory_space<vmem>>, vector<1024x128xf32>
      %cst_22 = arith.constant dense<0.000000e+00> : vector<2x128xf32>
      %20 = tpu.matmul %18, %19, %cst_22 {dimension_numbers = #tpu.dot_dimension_numbers<[1], [0], [0], [1], [0, 0, 1, 1], [], []>} : vector<2x1024xf32>, vector<1024x128xf32>, vector<2x128xf32> -> vector<2x128xf32>
      %c0_23 = arith.constant 0 : index
      %c0_24 = arith.constant 0 : index
      %21 = vector.load %arg4[%c0_23, %c0_24] : memref<1x128xf32, #tpu.memory_space<vmem>>, vector<1x128xf32>
      %22 = vector.broadcast %21 : vector<1x128xf32> to vector<2x128xf32>
      %23 = arith.addf %20, %22 : vector<2x128xf32>
      %24 = vector.shape_cast %23 : vector<2x128xf32> to vector<2x1x128xf32>
      %c0_25 = arith.constant 0 : index
      %c0_26 = arith.constant 0 : index
      %c0_27 = arith.constant 0 : index
      %25 = vector.load %arg5[%c0_25, %c0_26, %c0_27] : memref<2x1x128xf32, #tpu.memory_space<vmem>>, vector<2x1x128xf32>
      tpu.vector_store %arg5[%c0_25, %c0_26, %c0_27], %24 {strides = array<i32>} : memref<2x1x128xf32, #tpu.memory_space<vmem>>, vector<2x1x128xf32>,
    } else {
    }
    return
  }
  func.func @transform_0(%arg0: i32, %arg1: i32) -> (i32, i32, i32) {
    %c0_i32 = arith.constant 0 : i32
    %c0_i32_0 = arith.constant 0 : i32
    return %arg0, %arg1, %c0_i32 : i32, i32, i32
  }
  func.func @transform_1(%arg0: i32, %arg1: i32) -> (i32, i32) {
    %c0_i32 = arith.constant 0 : i32
    %c0_i32_0 = arith.constant 0 : i32
    %c0_i32_1 = arith.constant 0 : i32
    return %c0_i32, %c0_i32_0 : i32, i32
  }
  func.func @transform_2(%arg0: i32, %arg1: i32) -> (i32, i32) {
    %c0_i32 = arith.constant 0 : i32
    %c0_i32_0 = arith.constant 0 : i32
    %c0_i32_1 = arith.constant 0 : i32
    return %c0_i32, %c0_i32_0 : i32, i32
  }
  func.func @transform_3(%arg0: i32, %arg1: i32) -> (i32, i32, i32) {
    %c0_i32 = arith.constant 0 : i32
    %c0_i32_0 = arith.constant 0 : i32
    %c0_i32_1 = arith.constant 0 : i32
    return %arg0, %c0_i32, %c0_i32_0 : i32, i32, i32
  }
  func.func @transform_4(%arg0: i32, %arg1: i32) -> (i32, i32, i32) {
    %c0_i32 = arith.constant 0 : i32
    %c0_i32_0 = arith.constant 0 : i32
    return %arg0, %arg1, %c0_i32 : i32, i32, i32
  }
}

</mosaic_0001>

<bundles_post_ra>
// kernel: densenet_forward.1
= control target key start
LH: loop header
LB: loop body
LE: loop exit
PB: predicated region body
PF: predicated region fallthrough
CT: control target
= control target key end

     0   :  { %10 = vsyncpa [#allocation4], 0  ;;  %s2516_s0 = inlined_call_operand.vmem [shape: f32[4,16,1024], index: 0, kind: input, shape index: {}, may-alias: {0,4}]   ;;  %s2517_s1 = inlined_call_operand.vmem [shape: f32[1024,128], index: 1, kind: input, shape index: {}]   ;;  %s2518_s2 = inlined_call_operand.vmem [shape: f32[1,128], index: 2, kind: input, shape index: {}]   ;;  %s2519_s3 = inlined_call_operand.hbm [shape: f32[4,1,128], index: 3, kind: output, shape index: {0}]   ;;  %s2520_s4 = inlined_call_operand.vmem [shape: f32[4,16,1024], index: 4, kind: output, shape index: {1}, may-alias: {0,4}]  }
   0x1   :  { %12 = vsyncpa [#allocation4 + $0x1], 0  ;;  %s1658_s15 = smov 0   ;;  %s1660_s16 = smov 0  }
   0x2   :  { %s1662_s17 = smov 0   ;;  %s1664_s18 = smov 0  }
   0x3   :  { %s1666_s19 = smov 0   ;;  %s1668_s20 = smov 0  }
   0x4 LB: > { %s1200_s21 = sadd.s32 4294967295, %s1627_s20   ;;  %s1201_s22 = sadd.s32 4294967294, %s1627_s20   ;;  %s1627_s20 = sphi %s1668_s20, %s18_s20   ;;  %s1623_s19 = sphi %s1666_s19, %s2545_s19   ;;  %s1619_s18 = sphi %s1664_s18, %s2544_s18   ;;  %s1615_s17 = sphi %s1662_s17, %s2543_s17   ;;  %s1611_s16 = sphi %s1660_s16, %s2542_s16   ;;  %s1607_s15 = sphi %s1658_s15, %s2541_s15  }
   0x5   : > { %s30_s23 = sadd.s32 1, %s1623_s19  ;;  %s107_s24 = sadd.s32 1, %s1615_s17 }
   0x6   : > { %p32_p0 = scmp.ge.s32.totalorder %s30_s23, 2  ;;  %p117_p1 = scmp.ne.s32.totalorder %s1615_s17, %s1611_s16 }
   0x7   : > { %p118_p2 = scmp.eq.s32.totalorder %s1200_s21, 1  ;;  %p123_p3 = scmp.ne.s32.totalorder %s1611_s16, %s1607_s15 }
   0x8   : > { %s2547_s23 = smov (%p32_p0, %s30_s23), 0  ;;  %p124_p5 = scmp.eq.s32.totalorder %s1201_s22, 1 }
   0x9   : > { %p1698_p4 = por %p118_p2, %p117_p1  ;;  %s104_s26 = ssub.s32 %s1623_s19, %s2547_s23 }
   0xa   : > { %p1204_p6 = scmp.ge.s32.totalorder %s1627_s20, 1  ;;  %p105_p7 = scmp.eq.s32.totalorder %s104_s26, 0 }
   0xb   : > { %p1705_p8 = por %p124_p5, %p123_p3  ;;  %p192_p9 = scmp.lt.s32.totalorder %s1627_s20, 3 }
   0xc   : > { %s1711_s28 = scalar_select %p105_p7, %s1615_s17, %s107_s24  }
   0xd   : > { %p193_p10 = pnand %p1204_p6, %p192_p9 }
   0xe   : > { %v589_v0 = vld [vmem:[%s2517_s1 + $0x80] sm:$0xff] (!%p193_p10)  ;;  %v590_v1 = vld [vmem:[%s2517_s1 + $0x88] sm:$0xff] (!%p193_p10)  ;;  %v591_v11 = vld [vmem:[%s2517_s1 + $0x90] sm:$0xff] (!%p193_p10)  ;;  %s1206_s24 = sshll.u32 (!%p193_p10), %s1619_s18, 1  ;;  %vm724_vm0 = vcmask (!%p193_p10), 1041409   ;;  %s1222_s9 = sshll.u32 (!%p193_p10), %s1619_s18, 5 }
   0xf   : > { %196 = sbr.rel (%p193_p10) target bundleno = 385 (0x181), region = 32  ;;  %v573_v2 = vld [vmem:[%s2517_s1] sm:$0xff] (!%p193_p10)  ;;  %v1363_v3 = vpack.c.bf16 (!%p193_p10), %v590_v1, %v589_v0  ;;  %v574_v4 = vld [vmem:[%s2517_s1 + $0x8] sm:$0xff] (!%p193_p10)  ;;  %v592_v13 = vld [vmem:[%s2517_s1 + $0x98] sm:$0xff] (!%p193_p10)  ;;  %p1788_p11 = scmp.lt.s32.totalorder (!%p193_p10), %s1206_s24, 3 }
  0x10   : > { %v621_v5 = vld [vmem:[%s2517_s1 + $0x180] sm:$0xff] (!%p193_p10)  ;;  %v622_v6 = vld [vmem:[%s2517_s1 + $0x188] sm:$0xff] (!%p193_p10)  ;;  %v1365_v7 = vpack.c.bf16 (!%p193_p10), %v574_v4, %v573_v2  ;;  %v575_v14 = vld [vmem:[%s2517_s1 + $0x10] sm:$0xff] (!%p193_p10)  ;;  %v1367_v16 = vpack.c.bf16 (!%p193_p10), %v592_v13, %v591_v11  ;;  %s2468_s13 = scalar_lea.hbm (!%p193_p10), %s2519_s3, %s1222_s9  ;;  %s1630_s18 = smov (!%p193_p10), [#allocation3]  }
  0x11   : > { %v1395_v8 = vpack.c.bf16 (!%p193_p10), %v622_v6, %v621_v5  ;;  %v605_v9 = vld [vmem:[%s2517_s1 + $0x100] sm:$0xff] (!%p193_p10)  ;;  %v606_v10 = vld [vmem:[%s2517_s1 + $0x108] sm:$0xff] (!%p193_p10)  ;;  %1364 = vmatprep.subr.bf16.mxu0 (!%p193_p10), %v1363_v3  ;;  %v576_v15 = vld [vmem:[%s2517_s1 + $0x18] sm:$0xff] (!%p193_p10)  ;;  %s1553_s22 = sshll.u32 (!%p193_p10), %s1630_s18, 4  ;;  %s1554_s22 = int_to_ptr.vmem [resolvable:$false] %s1553_s22 }
  0x12   : > { %v1397_v12 = vpack.c.bf16 (!%p193_p10), %v606_v10, %v605_v9  ;;  %1366 = vmatpush3.bf16.msra.mxu0 (!%p193_p10), %v1365_v7  ;;  %v1369_v17 = vpack.c.bf16 (!%p193_p10), %v576_v15, %v575_v14  ;;  %v623_v18 = vld [vmem:[%s2517_s1 + $0x190] sm:$0xff] (!%p193_p10)  ;;  %v624_v19 = vld [vmem:[%s2517_s1 + $0x198] sm:$0xff] (!%p193_p10)  ;;  %v593_v23 = vld [vmem:[%s2517_s1 + $0xa0] sm:$0xff] (!%p193_p10)  ;;  %s1555_s5 = scalar_lea.vmem (!%p193_p10), %s1554_s22, 64 }
  0x13   : > { %1396 = vmatprep.subr.bf16.mxu1 (!%p193_p10), %v1395_v8  ;;  %v607_v20 = vld [vmem:[%s2517_s1 + $0x110] sm:$0xff] (!%p193_p10)  ;;  %v1399_v21 = vpack.c.bf16 (!%p193_p10), %v624_v19, %v623_v18  ;;  %v608_v22 = vld [vmem:[%s2517_s1 + $0x118] sm:$0xff] (!%p193_p10)  ;;  %v594_v24 = vld [vmem:[%s2517_s1 + $0xa8] sm:$0xff] (!%p193_p10)  ;;  %1368 = vmatprep.subr.bf16.mxu0 (!%p193_p10), %v1367_v16 }
  0x14   : > { %1398 = vmatpush3.bf16.msra.mxu1 (!%p193_p10), %v1397_v12  ;;  %v1401_v25 = vpack.c.bf16 (!%p193_p10), %v608_v22, %v607_v20  ;;  %v1371_v26 = vpack.c.bf16 (!%p193_p10), %v594_v24, %v593_v23  ;;  %v577_v27 = vld [vmem:[%s2517_s1 + $0x20] sm:$0xff] (!%p193_p10)  ;;  %v578_v28 = vld [vmem:[%s2517_s1 + $0x28] sm:$0xff] (!%p193_p10)  ;;  %v595_v35 = vld [vmem:[%s2517_s1 + $0xb0] sm:$0xff] (!%p193_p10) }
  0x15   : > { %v625_v29 = vld [vmem:[%s2517_s1 + $0x1a0] sm:$0xff] (!%p193_p10)  ;;  %1400 = vmatprep.subr.bf16.mxu1 (!%p193_p10), %v1399_v21  ;;  %v626_v30 = vld [vmem:[%s2517_s1 + $0x1a8] sm:$0xff] (!%p193_p10)  ;;  %v1373_v33 = vpack.c.bf16 (!%p193_p10), %v578_v28, %v577_v27  ;;  %v596_v36 = vld [vmem:[%s2517_s1 + $0xb8] sm:$0xff] (!%p193_p10) }
  0x16   : > { %v609_v31 = vld [vmem:[%s2517_s1 + $0x120] sm:$0xff]  ;;  %v610_v32 = vld [vmem:[%s2517_s1 + $0x128] sm:$0xff]  ;;  %1370 = vmatpush3.bf16.msra.mxu0 %v1369_v17  ;;  %v1403_v34 = vpack.c.bf16 %v626_v30, %v625_v29  ;;  %v579_v37 = vld [vmem:[%s2517_s1 + $0x30] sm:$0xff]  ;;  %v1375_v39 = vpack.c.bf16 %v596_v36, %v595_v35  ;;  %s2549_s24 = smov (!%p1788_p11, %s1206_s24), 3 }
  0x17   : > { %1372 = vmatprep.subr.bf16.mxu0 %v1371_v26  ;;  %v1405_v38 = vpack.c.bf16 %v610_v32, %v609_v31  ;;  %v580_v40 = vld [vmem:[%s2517_s1 + $0x38] sm:$0xff]  ;;  %v627_v41 = vld [vmem:[%s2517_s1 + $0x1b0] sm:$0xff]  ;;  %v597_v46 = vld [vmem:[%s2517_s1 + $0xc0] sm:$0xff]  ;;  %s1220_s10 = sshll.u32 %s2549_s24, 7  ;;  %s219_s24 = sand.u32 1, %s1611_s16  }
  0x18   : > { %1402 = vmatpush3.bf16.msra.mxu1 %v1401_v25  ;;  %v628_v42 = vld [vmem:[%s2517_s1 + $0x1b8] sm:$0xff]  ;;  %v611_v44 = vld [vmem:[%s2517_s1 + $0x130] sm:$0xff]  ;;  %v598_v47 = vld [vmem:[%s2517_s1 + $0xc8] sm:$0xff]  ;;  %v1377_v48 = vpack.c.bf16 %v580_v40, %v579_v37  ;;  %s1919_s26 = scalar_lea.vmem %s2516_s0, %s1220_s10  ;;  %s1966_s6 = scalar_lea.vmem %s2520_s4, %s1220_s10 }
  0x19   : > { %1404 = vmatprep.subr.bf16.mxu1 %v1403_v34  ;;  %v1407_v43 = vpack.c.bf16 %v628_v42, %v627_v41  ;;  %v612_v45 = vld [vmem:[%s2517_s1 + $0x138] sm:$0xff]  ;;  %v581_v49 = vld [vmem:[%s2517_s1 + $0x40] sm:$0xff]  ;;  %v630_v51 = vld [vmem:[%s2517_s1 + $0x1c8] sm:$0xff]  ;;  %v1379_v53 = vpack.c.bf16 %v598_v47, %v597_v46  ;;  %s1205_s10 = sshll.u32 %s219_s24, 1  ;;  %s2470_s14 = scalar_lea.sflag [#allocation4], %s219_s24 }
  0x1a   : > { %1374 = vmatpush3.bf16.msra.mxu0 %v1373_v33  ;;  %v629_v50 = vld [vmem:[%s2517_s1 + $0x1c0] sm:$0xff]  ;;  %v1409_v52 = vpack.c.bf16 %v612_v45, %v611_v44  ;;  %v582_v54 = vld [vmem:[%s2517_s1 + $0x48] sm:$0xff]  ;;  %v599_v58 = vld [vmem:[%s2517_s1 + $0xd0] sm:$0xff]  ;;  %s221_s7 = scalar_lea.vmem [#allocation3], %s1205_s10 }
  0x1b   : > { %1376 = vmatprep.subr.bf16.mxu0 %v1375_v39  ;;  %v613_v55 = vld [vmem:[%s2517_s1 + $0x140] sm:$0xff]  ;;  %v614_v56 = vld [vmem:[%s2517_s1 + $0x148] sm:$0xff]  ;;  %v1411_v57 = vpack.c.bf16 %v630_v51, %v629_v50  ;;  %v600_v59 = vld [vmem:[%s2517_s1 + $0xd8] sm:$0xff]  ;;  %v1381_v2 = vpack.c.bf16 %v582_v54, %v581_v49  ;;  %s1073_s8 = sshll.u32 %s221_s7, 4  ;;  %s2463_s8 = int_to_ptr.vmem [resolvable:$true] %s1073_s8 }
  0x1c   : > { %1406 = vmatpush3.bf16.msra.mxu1 %v1405_v38  ;;  %v631_v60 = vld [vmem:[%s2517_s1 + $0x1d0] sm:$0xff]  ;;  %v584_v62 = vld [vmem:[%s2517_s1 + $0x58] sm:$0xff]  ;;  %v601_v3 = vld [vmem:[%s2517_s1 + $0xe0] sm:$0xff]  ;;  %v1413_v6 = vpack.c.bf16 %v614_v56, %v613_v55  ;;  %v1383_v7 = vpack.c.bf16 %v600_v59, %v599_v58  ;;  %s1549_s21 = scalar_lea.vmem %s2463_s8, 32  ;;  %p1556_p1 = scmp.lt.s32.totalorder %s2463_s8, %s1554_s22 }
  0x1d   : > { %1408 = vmatprep.subr.bf16.mxu1 %v1407_v43  ;;  %v583_v61 = vld [vmem:[%s2517_s1 + $0x50] sm:$0xff]  ;;  %v632_v63 = vld [vmem:[%s2517_s1 + $0x1d8] sm:$0xff]  ;;  %v602_v4 = vld [vmem:[%s2517_s1 + $0xe8] sm:$0xff]  ;;  %p1550_p12 = scmp.ne.s32.totalorder %s2463_s8, %s1549_s21  ;;  %p1557_p2 = scmp.lt.s32.totalorder %s1555_s5, %s1549_s21 }
  0x1e   : > { %v1867_v0 = vld [vmem:[%s2517_s1 + $0x150] sm:$0xff]  ;;  %v1872_v1 = vld [vmem:[%s2517_s1 + $0x158] sm:$0xff]  ;;  %1378 = vmatpush3.bf16.msra.mxu0 %v1377_v48  ;;  %v1884_v5 = vld [vmem:[%s2517_s1 + $0x60] sm:$0xff]  ;;  %v1415_v11 = vpack.c.bf16 %v632_v63, %v631_v60  ;;  %v1385_v18 = vpack.c.bf16 %v584_v62, %v583_v61  ;;  %v1387_v23 = vpack.c.bf16 %v602_v4, %v601_v3 }
  0x1f   : > { %1380 = vmatprep.subr.bf16.mxu0 %v1379_v53  ;;  %v1889_v8 = vld [vmem:[%s2517_s1 + $0x68] sm:$0xff]  ;;  %v1894_v9 = vld [vmem:[%s2517_s1 + $0x1e0] sm:$0xff]  ;;  %v1912_v14 = vld [vmem:[%s2517_s1 + $0xf0] sm:$0xff]  ;;  %v1417_v19 = vpack.c.bf16 %v1872_v1, %v1867_v0  ;;  %p1551_p13 = pnand %p1550_p12, %p1698_p4  ;;  %p1558_p3 = por %p1557_p2, %p1556_p1 }
  0x20   : > { %1410 = vmatpush3.bf16.msra.mxu1 %v1409_v52  ;;  %v634_v10 = vld [vmem:[%s2517_s1 + $0x1e8] sm:$0xff]  ;;  %v1902_v12 = vld [vmem:[%s2517_s1 + $0x160] sm:$0xff]  ;;  %v1924_v15 = vld [vmem:[%s2517_s1 + $0xf8] sm:$0xff]  ;;  %v1389_v24 = vpack.c.bf16 %v1889_v8, %v1884_v5 }
  0x21   : > { %1412 = vmatprep.subr.bf16.mxu1 %v1411_v57  ;;  %v1907_v13 = vld [vmem:[%s2517_s1 + $0x168] sm:$0xff]  ;;  %v1929_v16 = vld [vmem:[%s2517_s1 + $0x70] sm:$0xff]  ;;  %v1934_v17 = vld [vmem:[%s2517_s1 + $0x78] sm:$0xff]  ;;  %v1419_v25 = vpack.c.bf16 %v634_v10, %v1894_v9  ;;  %v1391_v30 = vpack.c.bf16 %v1924_v15, %v1912_v14  ;;  %p1552_p0 = pneg %p1551_p13 }
  0x22   : > { %1382 = vmatpush3.bf16.msra.mxu0 %v1381_v2  ;;  %v1941_v20 = vld [vmem:[%s2517_s1 + $0x1f0] sm:$0xff]  ;;  %v1946_v21 = vld [vmem:[%s2517_s1 + $0x1f8] sm:$0xff]  ;;  %v283_v27 = vld [vmem:[%s1919_s26 + $0x8] sm:$0xff]  ;;  %v1421_v29 = vpack.c.bf16 %v1907_v13, %v1902_v12  ;;  %v1393_v36 = vpack.c.bf16 %v1934_v17, %v1929_v16 }
  0x23   : > { %v1951_v22 = vld [vmem:[%s2517_s1 + $0x170] sm:$0xff]  ;;  %1384 = vmatprep.subr.bf16.mxu0 %v1383_v7  ;;  %v1959_v26 = vld [vmem:[%s2517_s1 + $0x178] sm:$0xff]  ;;  %v291_v28 = vld [vmem:[%s1919_s26 + $0x48] sm:$0xff]  ;;  %v315_v33 = vmax.f32 %v283_v27, 0.0  ;;  %v1423_v50 = vpack.c.bf16 %v1946_v21, %v1941_v20  ;;  %p1559_p5 = pnand %p1558_p3, %p1552_p0 }
  0x24   : > { %1414 = vmatpush3.bf16.msra.mxu1 %v1413_v6  ;;  %v299_v31 = vld [vmem:[%s1919_s26 + $0x88] sm:$0xff]  ;;  %v323_v34 = vmax.f32 %v291_v28, 0.0  ;;  %v282_v35 = vld [vmem:[%s1919_s26] sm:$0xff]  ;;  %v1425_v51 = vpack.c.bf16 %v1959_v26, %v1951_v22 }
  0x25   : > { %1416 = vmatprep.subr.bf16.mxu1 %v1415_v11  ;;  %v307_v32 = vld [vmem:[%s1919_s26 + $0xc8] sm:$0xff]  ;;  %v331_v37 = vmax.f32 %v299_v31, 0.0  ;;  %v290_v39 = vld [vmem:[%s1919_s26 + $0x40] sm:$0xff]  ;;  %v314_v42 = vmax.f32 %v282_v35, 0.0 }
  0x26   : > { %v339_v38 = vmax.f32 %v307_v32, 0.0  ;;  %v298_v40 = vld [vmem:[%s1919_s26 + $0x80] sm:$0xff]  ;;  %1386 = vmatpush3.bf16.msra.mxu0 %v1385_v18  ;;  %v395_v43 = vadd.f32 %v323_v34, %v315_v33  ;;  %v322_v44 = vmax.f32 %v290_v39, 0.0  ;;  %v1992_v48 = vld [vmem:[%s2517_s1 + $0x288] sm:$0xff] }
  0x27   : > { %v306_v41 = vld [vmem:[%s1919_s26 + $0xc0] sm:$0xff]  ;;  %v330_v45 = vmax.f32 %v298_v40, 0.0  ;;  %1388 = vmatprep.subr.bf16.mxu0 %v1387_v23  ;;  %v686_v2 = vld [vmem:[%s2517_s1 + $0x388] sm:$0xff] }
  0x28   : > { %347 = vst [vmem:[%s1966_s6 + $0x8] sm:$0xff] %v315_v33  ;;  %355 = vst [vmem:[%s1966_s6 + $0x48] sm:$0xff] %v323_v34  ;;  %v338_v46 = vmax.f32 %v306_v41, 0.0  ;;  %v1987_v47 = vld [vmem:[%s2517_s1 + $0x280] sm:$0xff]  ;;  %1418 = vmatpush3.bf16.msra.mxu1 %v1417_v19  ;;  %v403_v52 = vadd.f32 %v339_v38, %v331_v37  ;;  %v467_v57 = vrot.slane %v395_v43, 4  ;;  %v394_v58 = vadd.f32 %v322_v44, %v314_v42 }
  0x29   : > { %1420 = vmatprep.subr.bf16.mxu1 %v1419_v25  ;;  %v685_v61 = vld [vmem:[%s2517_s1 + $0x380] sm:$0xff]  ;;  %v1427_v63 = vpack.c.bf16 %v1992_v48, %v1987_v47 }
  0x2a   : > { %v402_v59 = vadd.f32 %v338_v46, %v330_v45  ;;  %v515_v62 = vrot.slane %v403_v52, 4  ;;  %1390 = vmatpush3.bf16.msra.mxu0 %v1389_v24  ;;  %v468_v4 = vadd.f32 %v467_v57, %v395_v43  ;;  %v461_v5 = vrot.slane %v394_v58, 4 }
  0x2b   : > { %1392 = vmatprep.subr.bf16.mxu0 %v1391_v30  ;;  %v1459_v12 = vpack.c.bf16 %v686_v2, %v685_v61  ;;  %v2058_v61 = vld [vmem:[%s2517_s1 + $0x210] sm:$0xff] }
  0x2c   : > { %v509_v6 = vrot.slane %v402_v59, 4  ;;  %1422 = vmatpush3.bf16.msra.mxu1 %v1421_v29  ;;  %v516_v10 = vadd.f32 %v515_v62, %v403_v52  ;;  %v469_v14 = vrot.slane %v468_v4, 2  ;;  %v462_v15 = vadd.f32 %v461_v5, %v394_v58  ;;  %v2063_v62 = vld [vmem:[%s2517_s1 + $0x218] sm:$0xff]  ;;  %v2078_v5 = vld [vmem:[%s2517_s1 + $0x2a0] sm:$0xff] }
  0x2d   : > { %1424 = vmatprep.subr.bf16.mxu1 %v1423_v50 }
  0x2e   : > { %v510_v18 = vadd.f32 %v509_v6, %v402_v59  ;;  %v517_v21 = vrot.slane %v516_v10, 2  ;;  %1394 = vmatpush3.bf16.msra.mxu0 %v1393_v36  ;;  %v470_v25 = vadd.f32 %v469_v14, %v468_v4  ;;  %v463_v26 = vrot.slane %v462_v15, 2  ;;  %v2048_v59 = vld [vmem:[%s2517_s1 + $0x300] sm:$0xff]  ;;  %v2073_v4 = vld [vmem:[%s2517_s1 + $0x398] sm:$0xff]  ;;  %v2083_v6 = vld [vmem:[%s2517_s1 + $0x2a8] sm:$0xff] }
  0x2f   : > { %v285_v49 = vld [vmem:[%s1919_s26 + $0x18] sm:$0xff]  ;;  %1428 = vmatprep.subr.bf16.mxu0 %v1427_v63  ;;  %v2068_v63 = vld [vmem:[%s2517_s1 + $0x390] sm:$0xff]  ;;  %v2104_v14 = vld [vmem:[%s2517_s1 + $0x228] sm:$0xff] }
  0x30   : > { %363 = vst [vmem:[%s1966_s6 + $0x88] sm:$0xff] %v331_v37  ;;  %371 = vst [vmem:[%s1966_s6 + $0xc8] sm:$0xff] %v339_v38  ;;  %v317_v56 = vmax.f32 %v285_v49, 0.0  ;;  %v511_v27 = vrot.slane %v510_v18, 2  ;;  %1426 = vmatpush3.bf16.msra.mxu1 %v1425_v51  ;;  %v518_v29 = vadd.f32 %v517_v21, %v516_v10  ;;  %v471_v33 = vrot.slane %v470_v25, 1 }
  0x31   : > { %346 = vst [vmem:[%s1966_s6] sm:$0xff] %v314_v42  ;;  %v464_v34 = vadd.f32 %v463_v26, %v462_v15  ;;  %1460 = vmatprep.subr.bf16.mxu1 %v1459_v12  ;;  %v2094_v12 = vld [vmem:[%s2517_s1 + $0x318] sm:$0xff]  ;;  %v2109_v15 = vld [vmem:[%s2517_s1 + $0x3a0] sm:$0xff]  ;;  %v2141_v26 = vld [vmem:[%s2517_s1 + $0x230] sm:$0xff] }
  0x32   : > { %v512_v35 = vadd.f32 %v511_v27, %v510_v18  ;;  %v519_v16 = vrot.slane %v518_v29, 1  ;;  %v472_v39 = vadd.f32 %v471_v33, %v470_v25  ;;  %v2114_v18 = vld [vmem:[%s2517_s1 + $0x3a8] sm:$0xff]  ;;  %v2136_v25 = vld [vmem:[%s2517_s1 + $0x2b8] sm:$0xff]  ;;  %v2161_v33 = vld [vmem:[%s2517_s1 + $0x330] sm:$0xff] }
  0x33   : > { %v465_v40 = vrot.slane %v464_v34, 1  ;;  %v2146_v27 = vld [vmem:[%s2517_s1 + $0x238] sm:$0xff] }
  0x34   : > { %v513_v41 = vrot.slane %v512_v35, 1  ;;  %v520_v43 = vadd.f32 %v519_v16, %v518_v29  ;;  %v558_v49 = vmul.f32 0.0625, %v472_v39  ;;  %v2181_v16 = vld [vmem:[%s2517_s1 + $0x240] sm:$0xff]  ;;  %v1463_v39 = vpack.c.bf16 %v2073_v4, %v2068_v63 }
  0x35   : > { %v466_v50 = vadd.f32 %v465_v40, %v464_v34  ;;  %v2166_v34 = vld [vmem:[%s2517_s1 + $0x338] sm:$0xff]  ;;  %v2197_v40 = vld [vmem:[%s2517_s1 + $0x3c0] sm:$0xff] }
  0x36   : > { %v514_v51 = vadd.f32 %v513_v41, %v512_v35  ;;  %v2171_v35 = vld [vmem:[%s2517_s1 + $0x2c0] sm:$0xff]  ;;  %v2202_v41 = vld [vmem:[%s2517_s1 + $0x3c8] sm:$0xff] }
  0x38   : > { %v293_v53 = vld [vmem:[%s1919_s26 + $0x58] sm:$0xff] }
  0x39   : > { %v301_v54 = vld [vmem:[%s1919_s26 + $0x98] sm:$0xff]  ;;  %v325_v60 = vmax.f32 %v293_v53, 0.0  ;;  %v2040_v53 = vld [vmem:[%s2517_s1 + $0x290] sm:$0xff] }
  0x3a   : > { %v309_v55 = vld [vmem:[%s1919_s26 + $0xd8] sm:$0xff]  ;;  %v333_v0 = vmax.f32 %v301_v54, 0.0 }
  0x3b   : > { %354 = vst [vmem:[%s1966_s6 + $0x40] sm:$0xff] %v322_v44  ;;  %362 = vst [vmem:[%s1966_s6 + $0x80] sm:$0xff] %v330_v45  ;;  %v341_v1 = vmax.f32 %v309_v55, 0.0  ;;  %v397_v7 = vadd.f32 %v325_v60, %v317_v56  ;;  %v637_v45 = vld [vmem:[%s2517_s1 + $0x200] sm:$0xff]  ;;  %v656_v54 = vld [vmem:[%s2517_s1 + $0x298] sm:$0xff]  ;;  %v566_v55 = vmul.f32 0.0625, %v520_v43 }
  0x3c   : > { %370 = vst [vmem:[%s1966_s6 + $0xc0] sm:$0xff] %v338_v46  ;;  %349 = vst [vmem:[%s1966_s6 + $0x18] sm:$0xff] %v317_v56  ;;  %v638_v46 = vld [vmem:[%s2517_s1 + $0x208] sm:$0xff] }
  0x3d   : > { %v405_v11 = vadd.f32 %v341_v1, %v333_v0  ;;  %v479_v19 = vrot.slane %v397_v7, 4  ;;  %v2212_v43 = vld [vmem:[%s2517_s1 + $0x348] sm:$0xff] }
  0x3f   : > { %v527_v22 = vrot.slane %v405_v11, 4  ;;  %v480_v28 = vadd.f32 %v479_v19, %v397_v7  ;;  %v726_v7 = vsel %vm724_vm0, %v566_v55, %v558_v49  ;;  %v2119_v19 = vld [vmem:[%s2517_s1 + $0x320] sm:$0xff]  ;;  %v1435_v49 = vpack.c.bf16 %v2083_v6, %v2078_v5  ;;  %v2255_v55 = vld [vmem:[%s2517_s1 + $0x358] sm:$0xff] }
  0x40   : > { %805 = vmatprep.mubr.f32.mxu0 %v726_v7  ;;  %v1441_v7 = vpack.c.bf16 %v2146_v27, %v2141_v26 }
  0x41   : > { %v528_v30 = vadd.f32 %v527_v22, %v405_v11  ;;  %v481_v37 = vrot.slane %v480_v28, 2  ;;  %v2089_v11 = vld [vmem:[%s2517_s1 + $0x310] sm:$0xff] }
  0x43   : > { %v284_v3 = vld [vmem:[%s1919_s26 + $0x10] sm:$0xff]  ;;  %v529_v17 = vrot.slane %v528_v30, 2  ;;  %v482_v42 = vadd.f32 %v481_v37, %v480_v28  ;;  %v2176_v37 = vld [vmem:[%s2517_s1 + $0x2c8] sm:$0xff] }
  0x44   : > { %357 = vst [vmem:[%s1966_s6 + $0x58] sm:$0xff] %v325_v60  ;;  %v316_v13 = vmax.f32 %v284_v3, 0.0  ;;  %v2053_v60 = vld [vmem:[%s2517_s1 + $0x308] sm:$0xff]  ;;  %v1429_v3 = vpack.c.bf16 %v638_v46, %v637_v45  ;;  %v2222_v45 = vld [vmem:[%s2517_s1 + $0x2d8] sm:$0xff] }
  0x45   : > { %v530_v44 = vadd.f32 %v529_v17, %v528_v30  ;;  %v483_v52 = vrot.slane %v482_v42, 1  ;;  %v2186_v17 = vld [vmem:[%s2517_s1 + $0x248] sm:$0xff] }
  0x47   : > { %v531_v56 = vrot.slane %v530_v44, 1  ;;  %v484_v2 = vadd.f32 %v483_v52, %v482_v42  ;;  %v2207_v42 = vld [vmem:[%s2517_s1 + $0x340] sm:$0xff]  ;;  %v2240_v52 = vld [vmem:[%s2517_s1 + $0x3d0] sm:$0xff] }
  0x49   : > { %v560_v22 = vmul.f32 0.0625, %v484_v2  ;;  %v2283_v2 = vld [vmem:[%s2517_s1 + $0x268] sm:$0xff] }
  0x4b   : > { %v292_v8 = vld [vmem:[%s1919_s26 + $0x50] sm:$0xff] }
  0x4c   : > { %v300_v9 = vld [vmem:[%s1919_s26 + $0x90] sm:$0xff]  ;;  %v324_v23 = vmax.f32 %v292_v8, 0.0  ;;  %v532_v8 = vadd.f32 %v531_v56, %v530_v44  ;;  %v2260_v56 = vld [vmem:[%s2517_s1 + $0x2e0] sm:$0xff] }
  0x4d   : > { %365 = vst [vmem:[%s1966_s6 + $0x98] sm:$0xff] %v333_v0  ;;  %373 = vst [vmem:[%s1966_s6 + $0xd8] sm:$0xff] %v341_v1  ;;  %v332_v24 = vmax.f32 %v300_v9, 0.0  ;;  %v557_v0 = vmul.f32 0.0625, %v466_v50  ;;  %v565_v1 = vmul.f32 0.0625, %v514_v51  ;;  %v2217_v44 = vld [vmem:[%s2517_s1 + $0x2d0] sm:$0xff] }
  0x4e   : > { %v396_v32 = vadd.f32 %v324_v23, %v316_v13  ;;  %v568_v28 = vmul.f32 0.0625, %v532_v8  ;;  %v2230_v50 = vld [vmem:[%s2517_s1 + $0x250] sm:$0xff]  ;;  %v2235_v51 = vld [vmem:[%s2517_s1 + $0x258] sm:$0xff] }
  0x4f   : > { %v725_v21 = vsel %vm724_vm0, %v565_v1, %v557_v0  ;;  %v2273_v0 = vld [vmem:[%s2517_s1 + $0x2e8] sm:$0xff]  ;;  %v2278_v1 = vld [vmem:[%s2517_s1 + $0x260] sm:$0xff]  ;;  %v2292_v8 = vld [vmem:[%s2517_s1 + $0x2f0] sm:$0xff] }
  0x50   : > { %v473_v38 = vrot.slane %v396_v32, 4  ;;  %806 = vmatmul.mubr.f32.vlgmr.msra.gmra.mrb[0].mxu0 %v725_v21  ;;  %v728_v46 = vsel %vm724_vm0, %v568_v28, %v560_v22 }
  0x51   : > { %1430 = vmatpush3.bf16.msra.mxu0 %v1429_v3  ;;  %875 = vmatprep.mubr.f32.mxu1 %v728_v46 }
  0x52   : > { %v474_v47 = vadd.f32 %v473_v38, %v396_v32  ;;  %v2156_v32 = vld [vmem:[%s2517_s1 + $0x3b8] sm:$0xff]  ;;  %v1433_v38 = vpack.c.bf16 %v2063_v62, %v2058_v61 }
  0x54   : > { %v308_v20 = vld [vmem:[%s1919_s26 + $0xd0] sm:$0xff]  ;;  %v475_v57 = vrot.slane %v474_v47, 2 }
  0x55   : > { %348 = vst [vmem:[%s1966_s6 + $0x10] sm:$0xff] %v316_v13  ;;  %v340_v31 = vmax.f32 %v308_v20, 0.0  ;;  %356 = vst [vmem:[%s1966_s6 + $0x50] sm:$0xff] %v324_v23  ;;  %v2099_v13 = vld [vmem:[%s2517_s1 + $0x220] sm:$0xff]  ;;  %v2124_v20 = vld [vmem:[%s2517_s1 + $0x328] sm:$0xff]  ;;  %v1431_v23 = vpack.c.bf16 %v656_v54, %v2040_v53 }
  0x56   : > { %364 = vst [vmem:[%s1966_s6 + $0x90] sm:$0xff] %v332_v24  ;;  %v476_v9 = vadd.f32 %v475_v57, %v474_v47  ;;  %v2245_v53 = vld [vmem:[%s2517_s1 + $0x3d8] sm:$0xff]  ;;  %v2250_v54 = vld [vmem:[%s2517_s1 + $0x350] sm:$0xff] }
  0x57   : > { %372 = vst [vmem:[%s1966_s6 + $0xd0] sm:$0xff] %v340_v31  ;;  %v404_v36 = vadd.f32 %v340_v31, %v332_v24  ;;  %v2131_v24 = vld [vmem:[%s2517_s1 + $0x2b0] sm:$0xff]  ;;  %1432 = vmatprep.subr.bf16.mxu0 %v1431_v23  ;;  %v2315_v23 = vld [vmem:[%s2517_s1 + $0x278] sm:$0xff] }
  0x58   : > { %v477_v29 = vrot.slane %v476_v9, 1  ;;  %v2151_v31 = vld [vmem:[%s2517_s1 + $0x3b0] sm:$0xff]  ;;  %v1439_v6 = vpack.c.bf16 %v2136_v25, %v2131_v24  ;;  %1434 = vmatpush3.bf16.msra.mxu0 %v1433_v38 }
  0x59   : > { %v521_v48 = vrot.slane %v404_v36, 4  ;;  %1436 = vmatprep.subr.bf16.mxu0 %v1435_v49 }
  0x5a   : > { %v478_v47 = vadd.f32 %v477_v29, %v476_v9  ;;  %v2297_v9 = vld [vmem:[%s2517_s1 + $0x2f8] sm:$0xff] }
  0x5b   : > { %v522_v58 = vadd.f32 %v521_v48, %v404_v36  ;;  %v1461_v36 = vpack.c.bf16 %v2053_v60, %v2048_v59 }
  0x5c   : > { %v559_v5 = vmul.f32 0.0625, %v478_v47 }
  0x5d   : > { %v523_v10 = vrot.slane %v522_v58, 2 }
  0x5e   : > { %v287_v24 = vld [vmem:[%s1919_s26 + $0x28] sm:$0xff]  ;;  %v294_v29 = vld [vmem:[%s1919_s26 + $0x60] sm:$0xff]  ;;  %v297_v61 = vld [vmem:[%s1919_s26 + $0x78] sm:$0xff] }
  0x5f   : > { %v524_v30 = vadd.f32 %v523_v10, %v522_v58  ;;  %v1437_v58 = vpack.c.bf16 %v2104_v14, %v2099_v13  ;;  %v2302_v10 = vld [vmem:[%s2517_s1 + $0x270] sm:$0xff]  ;;  %v295_v25 = vld [vmem:[%s1919_s26 + $0x68] sm:$0xff]  ;;  %v302_v13 = vld [vmem:[%s1919_s26 + $0xa0] sm:$0xff] }
  0x60   : > { %v303_v46 = vld [vmem:[%s1919_s26 + $0xa8] sm:$0xff]  ;;  %v310_v38 = vld [vmem:[%s1919_s26 + $0xe0] sm:$0xff]  ;;  %v327_v21 = vmax.f32 %v295_v25, 0.0  ;;  %v313_v22 = vld [vmem:[%s1919_s26 + $0xf8] sm:$0xff] }
  0x61   : > { %v525_v48 = vrot.slane %v524_v30, 1  ;;  %v311_v47 = vld [vmem:[%s1919_s26 + $0xe8] sm:$0xff]  ;;  %1438 = vmatpush3.bf16.msra.mxu0 %v1437_v58  ;;  %v335_v57 = vmax.f32 %v303_v46, 0.0  ;;  %v334_v58 = vmax.f32 %v302_v13, 0.0  ;;  %v342_v14 = vmax.f32 %v310_v38, 0.0 }
  0x62   : > { %1440 = vmatprep.subr.bf16.mxu0 %v1439_v6  ;;  %v2525_v46 = vpack.c.bf16 %v2176_v37, %v2171_v35 }
  0x63   : > { %v526_v3 = vadd.f32 %v525_v48, %v524_v30  ;;  %v286_v48 = vld [vmem:[%s1919_s26 + $0x20] sm:$0xff]  ;;  %v319_v30 = vmax.f32 %v287_v24, 0.0  ;;  %v288_v24 = vld [vmem:[%s1919_s26 + $0x30] sm:$0xff]  ;;  %v406_v63 = vadd.f32 %v342_v14, %v334_v58 }
  0x64   : > { %v318_v49 = vmax.f32 %v286_v48, 0.0  ;;  %v320_v38 = vmax.f32 %v288_v24, 0.0  ;;  %v2528_v24 = vpack.c.bf16 %v2124_v20, %v2119_v19 }
  0x65   : > { %v567_v28 = vmul.f32 0.0625, %v526_v3  ;;  %v289_v3 = vld [vmem:[%s1919_s26 + $0x38] sm:$0xff]  ;;  %v399_v25 = vadd.f32 %v327_v21, %v319_v30  ;;  %1442 = vmatpush3.bf16.msra.mxu0 %v1441_v7  ;;  %v533_v27 = vrot.slane %v406_v63, 4 }
  0x66   : > { %v321_v60 = vmax.f32 %v289_v3, 0.0  ;;  %1444 = vmatprep.subr.bf16.mxu0 %v2525_v46 }
  0x67   : > { %v727_v62 = vsel %vm724_vm0, %v567_v28, %v559_v5  ;;  %v343_v5 = vmax.f32 %v311_v47, 0.0  ;;  %v305_v28 = vld [vmem:[%s1919_s26 + $0xb8] sm:$0xff]  ;;  %v2526_v47 = vpack.c.bf16 %v2114_v18, %v2109_v15  ;;  %v534_v35 = vadd.f32 %v533_v27, %v406_v63 }
  0x68   : > { %876 = vmatmul.mubr.f32.vlgmr.msra.gmra.mrb[0].mxu1 %v727_v62  ;;  %v326_v62 = vmax.f32 %v294_v29, 0.0  ;;  %351 = vst [vmem:[%s1966_s6 + $0x28] sm:$0xff] %v319_v30  ;;  %359 = vst [vmem:[%s1966_s6 + $0x68] sm:$0xff] %v327_v21  ;;  %v337_v4 = vmax.f32 %v305_v28, 0.0  ;;  %v2527_v28 = vpack.c.bf16 %v2186_v17, %v2181_v16  ;;  %v2530_v16 = vpack.c.bf16 %v2156_v32, %v2151_v31 }
  0x69   : > { %1462 = vmatpush3.bf16.msra.mxu1 %v1461_v36  ;;  %v407_v59 = vadd.f32 %v343_v5, %v335_v57  ;;  %v329_v36 = vmax.f32 %v297_v61, 0.0  ;;  %v491_v61 = vrot.slane %v399_v25, 4  ;;  %v2532_v31 = vpack.c.bf16 %v2166_v34, %v2161_v33  ;;  %v697_v33 = vld [vmem:[%s2517_s1 + $0x3e0] sm:$0xff]  ;;  %v698_v34 = vld [vmem:[%s2517_s1 + $0x3e8] sm:$0xff] }
  0x6a   : > { %1464 = vmatprep.subr.bf16.mxu1 %v1463_v39  ;;  %v398_v13 = vadd.f32 %v326_v62, %v318_v49  ;;  %v345_v39 = vmax.f32 %v313_v22, 0.0  ;;  %v2524_v22 = vpack.c.bf16 %v2094_v12, %v2089_v11  ;;  %1446 = vmatpush3.bf16.msra.mxu0 %v2527_v28  ;;  %v2533_v32 = vpack.c.bf16 %v2273_v0, %v2260_v56 }
  0x6b   : > { %v539_v21 = vrot.slane %v407_v59, 4  ;;  %v492_v48 = vadd.f32 %v491_v61, %v399_v25  ;;  %v2529_v25 = vpack.c.bf16 %v2222_v45, %v2217_v44  ;;  %v2531_v44 = vpack.c.bf16 %v2235_v51, %v2230_v50 }
  0x6c   : > { %v485_v26 = vrot.slane %v398_v13, 4  ;;  %v409_v7 = vadd.f32 %v345_v39, %v337_v4  ;;  %v2534_v50 = vpack.c.bf16 %v2202_v41, %v2197_v40  ;;  %v2535_v40 = vpack.c.bf16 %v2283_v2, %v2278_v1 }
  0x6d   : > { %1466 = vmatpush3.bf16.msra.mxu1 %v2524_v22  ;;  %1448 = vmatprep.subr.bf16.mxu0 %v2529_v25  ;;  %v2538_v1 = vpack.c.bf16 %v2245_v53, %v2240_v52  ;;  %v1483_v2 = vpack.c.bf16 %v698_v34, %v697_v33  ;;  %v700_v52 = vld [vmem:[%s2517_s1 + $0x3f8] sm:$0xff]  ;;  %v2540_v25 = vpack.c.bf16 %v2255_v55, %v2250_v54 }
  0x6e   : > { %1468 = vmatprep.subr.bf16.mxu1 %v2526_v47  ;;  %v486_v3 = vadd.f32 %v485_v26, %v398_v13  ;;  %v551_v37 = vrot.slane %v409_v7, 4  ;;  %1450 = vmatpush3.bf16.msra.mxu0 %v2531_v44 }
  0x6f   : > { %v296_v6 = vld [vmem:[%s1919_s26 + $0x70] sm:$0xff]  ;;  %1452 = vmatprep.subr.bf16.mxu0 %v2533_v32  ;;  %v1629_v32 = vmov 1966171168  }
  0x70   : > { %367 = vst [vmem:[%s1966_s6 + $0xa8] sm:$0xff] %v335_v57  ;;  %375 = vst [vmem:[%s1966_s6 + $0xe8] sm:$0xff] %v343_v5  ;;  %v401_v57 = vadd.f32 %v329_v36, %v321_v60 }
  0x71   : > { %350 = vst [vmem:[%s1966_s6 + $0x20] sm:$0xff] %v318_v49  ;;  %358 = vst [vmem:[%s1966_s6 + $0x60] sm:$0xff] %v326_v62  ;;  %v540_v49 = vadd.f32 %v539_v21, %v407_v59  ;;  %v493_v62 = vrot.slane %v492_v48, 2  ;;  %1470 = vmatpush3.bf16.msra.mxu1 %v2528_v24  ;;  %v487_v59 = vrot.slane %v486_v3, 2 }
  0x72   : > { %v503_v11 = vrot.slane %v401_v57, 4  ;;  %1472 = vmatprep.subr.bf16.mxu1 %v2530_v16  ;;  %1454 = vmatpush3.bf16.msra.mxu0 %v2535_v40 }
  0x73   : > { %v494_v17 = vadd.f32 %v493_v62, %v492_v48  ;;  %v681_v62 = vld [vmem:[%s2517_s1 + $0x360] sm:$0xff] }
  0x74   : > { %v504_v15 = vadd.f32 %v503_v11, %v401_v57 }
  0x75   : > { %v495_v45 = vrot.slane %v494_v17, 1  ;;  %1474 = vmatpush3.bf16.msra.mxu1 %v2532_v31 }
  0x76   : > { %v505_v63 = vrot.slane %v504_v15, 2  ;;  %1476 = vmatprep.subr.bf16.mxu1 %v2534_v50 }
  0x77   : > { %v496_v51 = vadd.f32 %v495_v45, %v494_v17  ;;  %v683_v17 = vld [vmem:[%s2517_s1 + $0x370] sm:$0xff] }
  0x78   : > { %v304_v29 = vld [vmem:[%s1919_s26 + $0xb0] sm:$0xff]  ;;  %v506_v21 = vadd.f32 %v505_v63, %v504_v15 }
  0x79   : > { %366 = vst [vmem:[%s1966_s6 + $0xa0] sm:$0xff] %v334_v58  ;;  %374 = vst [vmem:[%s1966_s6 + $0xe0] sm:$0xff] %v342_v14  ;;  %v328_v14 = vmax.f32 %v296_v6, 0.0  ;;  %v336_v12 = vmax.f32 %v304_v29, 0.0  ;;  %v541_v58 = vrot.slane %v540_v49, 2  ;;  %v562_v41 = vmul.f32 0.0625, %v496_v51 }
  0x7a   : > { %353 = vst [vmem:[%s1966_s6 + $0x38] sm:$0xff] %v321_v60  ;;  %361 = vst [vmem:[%s1966_s6 + $0x78] sm:$0xff] %v329_v36  ;;  %v535_v60 = vrot.slane %v534_v35, 2  ;;  %v552_v36 = vadd.f32 %v551_v37, %v409_v7  ;;  %v507_v27 = vrot.slane %v506_v21, 1 }
  0x7b   : > { %v400_v18 = vadd.f32 %v328_v14, %v320_v38  ;;  %v542_v13 = vadd.f32 %v541_v58, %v540_v49  ;;  %v699_v58 = vld [vmem:[%s2517_s1 + $0x3f0] sm:$0xff] }
  0x7c   : > { %v536_v19 = vadd.f32 %v535_v60, %v534_v35  ;;  %v553_v20 = vrot.slane %v552_v36, 2  ;;  %v508_v49 = vadd.f32 %v507_v27, %v506_v21  ;;  %v1487_v16 = vpack.c.bf16 %v700_v52, %v699_v58 }
  0x7d   : > { %v543_v61 = vrot.slane %v542_v13, 1 }
  0x7e   : > { %v554_v22 = vadd.f32 %v553_v20, %v552_v36 }
  0x7f   : > { %v544_v26 = vadd.f32 %v543_v61, %v542_v13 }
  0x81   : > { %v312_v30 = vld [vmem:[%s1919_s26 + $0xf0] sm:$0xff]  ;;  %v570_v48 = vmul.f32 0.0625, %v544_v26 }
  0x82   : > { %369 = vst [vmem:[%s1966_s6 + $0xb8] sm:$0xff] %v337_v4  ;;  %377 = vst [vmem:[%s1966_s6 + $0xf8] sm:$0xff] %v345_v39  ;;  %v344_v5 = vmax.f32 %v312_v30, 0.0  ;;  %v497_v4 = vrot.slane %v400_v18, 4  ;;  %v488_v39 = vadd.f32 %v487_v59, %v486_v3  ;;  %v2537_v3 = vpack.c.bf16 %v2297_v9, %v2292_v8 }
  0x83   : > { %352 = vst [vmem:[%s1966_s6 + $0x30] sm:$0xff] %v320_v38  ;;  %360 = vst [vmem:[%s1966_s6 + $0x70] sm:$0xff] %v328_v14  ;;  %v537_v38 = vrot.slane %v536_v19, 1  ;;  %v555_v14 = vrot.slane %v554_v22, 1  ;;  %v564_v8 = vmul.f32 0.0625, %v508_v49 }
  0x84   : > { %368 = vst [vmem:[%s1966_s6 + $0xb0] sm:$0xff] %v336_v12  ;;  %376 = vst [vmem:[%s1966_s6 + $0xf0] sm:$0xff] %v344_v5  ;;  %v408_v6 = vadd.f32 %v344_v5, %v336_v12  ;;  %v498_v57 = vadd.f32 %v497_v4, %v400_v18  ;;  %v489_v30 = vrot.slane %v488_v39, 1  ;;  %v2536_v12 = vpack.c.bf16 %v2212_v43, %v2207_v42  ;;  %v682_v42 = vld [vmem:[%s2517_s1 + $0x368] sm:$0xff] }
  0x85   : > { %v538_v0 = vadd.f32 %v537_v38, %v536_v19  ;;  %1456 = vmatprep.subr.bf16.mxu0 %v2537_v3  ;;  %v556_v5 = vadd.f32 %v555_v14, %v554_v22  ;;  %v730_v43 = vsel %vm724_vm0, %v570_v48, %v562_v41  ;;  %v2539_v18 = vpack.c.bf16 %v2315_v23, %v2302_v10  ;;  %v684_v10 = vld [vmem:[%s2517_s1 + $0x378] sm:$0xff]  ;;  %v1212_v19 = vld [vmem:[%s2518_s2] ss:$0 sm:$0xff] }
  0x86   : > { %v545_v29 = vrot.slane %v408_v6, 4  ;;  %v499_v7 = vrot.slane %v498_v57, 2  ;;  %v490_v56 = vadd.f32 %v489_v30, %v488_v39  ;;  %1478 = vmatpush3.bf16.msra.mxu1 %v2536_v12  ;;  %945 = vmatprep.mubr.f32.mxu0 %v730_v43  ;;  %v1485_v59 = vpack.c.bf16 %v682_v42, %v681_v62 }
  0x87   : > { %v569_v37 = vmul.f32 0.0625, %v538_v0  ;;  %1480 = vmatprep.subr.bf16.mxu1 %v2538_v1  ;;  %v572_v53 = vmul.f32 0.0625, %v556_v5  ;;  %1458 = vmatpush3.bf16.msra.mxu0 %v2539_v18  ;;  %v1489_v54 = vpack.c.bf16 %v684_v10, %v683_v17  ;;  %v1023_v30 = vunpack.c.l.s4 %v1629_v32 }
  0x88   : > { %v546_v46 = vadd.f32 %v545_v29, %v408_v6  ;;  %v500_v11 = vadd.f32 %v499_v7, %v498_v57  ;;  %v561_v35 = vmul.f32 0.0625, %v490_v56  ;;  %v1025_v38 = vlaneseq }
  0x89   : > { %v732_v60 = vsel %vm724_vm0, %v572_v53, %v564_v8 }
  0x8a   : > { %v547_v47 = vrot.slane %v546_v46, 2  ;;  %v501_v9 = vrot.slane %v500_v11, 1  ;;  %v729_v24 = vsel %vm724_vm0, %v569_v37, %v561_v35  ;;  %1482 = vmatpush3.bf16.msra.mxu1 %v2540_v25  ;;  %1015 = vmatprep.mubr.f32.mxu1 %v732_v60  ;;  %v1026_v50 = vshrl.u32 %v1025_v38, 7 }
  0x8b   : > { %1484 = vmatprep.subr.bf16.mxu1 %v1483_v2  ;;  %946 = vmatmul.mubr.f32.vlgmr.msra.gmra.mrb[2].mxu0 %v729_v24 }
  0x8c   : > { %v548_v28 = vadd.f32 %v547_v47, %v546_v46  ;;  %v502_v36 = vadd.f32 %v501_v9, %v500_v11  ;;  %v1024_v46 = vunpack.c.0.s8 %v1023_v30 }
  0x8e   : > { %v549_v15 = vrot.slane %v548_v28, 1  ;;  %1486 = vmatpush3.bf16.msra.mxu1 %v1485_v59  ;;  %v563_v55 = vmul.f32 0.0625, %v502_v36  ;;  %v1027_v7 = vsub.s32 %v1024_v46, %v1026_v50 }
  0x8f   : > { %1488 = vmatprep.subr.bf16.mxu1 %v1487_v16 }
  0x90   : > { %v550_v6 = vadd.f32 %v549_v15, %v548_v28 }
  0x92   : > { %v571_v23 = vmul.f32 0.0625, %v550_v6  ;;  %1490 = vmatpush3.bf16.msra.mxu1 %v1489_v54 }
  0x94   : > { %v731_v13 = vsel %vm724_vm0, %v571_v23, %v563_v55 }
  0x95   : > { %1016 = vmatmul.mubr.f32.vlgmr.msra.gmra.mrb[2].mxu1 %v731_v13 }
 0x123   : > { %v1255_v63 = vpop.f32.mrb[0].mxu0 }
 0x124   : > { %v1256_v4 = vpop.f32.mrb[1].mxu0 }
 0x125   : > { %v1257_v39 = vadd.f32 %v1256_v4, %v1255_v63 }
 0x127   : > { %v808_v20 = vadd.f32 %v1257_v39, %v1212_v19 }
 0x13b   : > { %v1290_v29 = vpop.f32.mrb[0].mxu1 }
 0x13c   : > { %v1291_v44 = vpop.f32.mrb[1].mxu1 }
 0x13d   : > { %v1292_v45 = vadd.f32 %v1291_v44, %v1290_v29 }
 0x13f   : > { %v878_v61 = vadd.f32 %v1292_v45, %v808_v20 }
 0x15e   : > { %v1325_v21 = vpop.f32.mrb[2].mxu0 }
 0x15f   : > { %v1326_v57 = vpop.f32.mrb[3].mxu0 }
 0x160   : > { %v1327_v31 = vadd.f32 %v1326_v57, %v1325_v21 }
 0x162   : > { %v948_v22 = vadd.f32 %v1327_v31, %v878_v61 }
 0x168   : > { %v1360_v51 = vpop.f32.mrb[2].mxu1 }
 0x169   : > { %v1361_v26 = vpop.f32.mrb[3].mxu1 }
 0x16a   : > { %v1362_v27 = vadd.f32 %v1361_v26, %v1360_v51 }
 0x16c   : > { %v1018_v33 = vadd.f32 %v1362_v27, %v948_v22 }
 0x16e   : > { %v1028_v34 = vrot.slane %v1018_v33, %v1027_v7 }
 0x170   : > { %v1029_v56 = vcombine.high %v1028_v34, %v1028_v34  ;;  %1213 = vst.sshfl [vmem:[%s221_s7] sm:$0x1 pattern:$0x73625140] %v1028_v34 }
 0x172   : > { %1214 = vst.sshfl [vmem:[%s221_s7 + $0x1] sm:$0x1 pattern:$0x73625140] %v1029_v56 }
 0x173   : > { %1562 = shalt.err (!%p1559_p5)
}
 0x174   : > { %s1563_s29 = scalar_lea.hbm %s2468_s13, 32  ;;  %s1567_s6 = scalar_lea.hbm %s2519_s3, 64 }
 0x175   : > { %p1564_p6 = scmp.ne.s32.totalorder %s2468_s13, %s1563_s29  ;;  %p1568_p10 = scmp.lt.u32.totalorder %s2468_s13, %s2519_s3 }
 0x176   : > { %p1569_p11 = scmp.lt.u32.totalorder %s1567_s6, %s1563_s29  ;;  %p1571_p13 = scmp.lt.u32.totalorder %s1563_s29, %s2468_s13 }
 0x177   : > { %p1565_p7 = pnand %p1564_p6, %p1698_p4 }
 0x178   : > { %p1570_p12 = por %p1569_p11, %p1568_p10 }
 0x179   : > { %p1566_p9 = pneg %p1565_p7 }
 0x17a   : > { %p1572_p0 = por %p1571_p13, %p1570_p12 }
 0x17c   : > { %p1573_p1 = pnand %p1572_p0, %p1566_p9 }
 0x17e   : > { %1576 = shalt.err (!%p1573_p1)
}
 0x17f   : > { %s1631_s7 = smov 16   ;;  %s1632_s9 = smov 1  }
 0x180   : > { %1491 = dma.vmem_to_hbm [thread:$0]  (%p1698_p4), %s2463_s8, 32, %s2468_s13, %s2470_s14, %s1631_s7, %s1631_s7, %s1632_s9  }
 0x181 PF: > { %p1497_p2 = scmp.ge.s32.totalorder %s1627_s20, 2  ;;  %s1093_s11 = sand.u32 1, %s1607_s15  }
 0x182   : > { %s1094_s12 = scalar_lea.sflag [#allocation4], %s1093_s11 }
 0x183   : > { %p1494_p3 = pnand %p1497_p2, %p1705_p8 }
 0x185   : > { %1602 = dma.done.wait (!%p1494_p3), %s1094_s12, 32  }
 0x186   : > { %1604 = vsyncadd (!%p1494_p3), %s1094_s12, 4294967264  ;;  %s18_s20 = sadd.s32 1, %s1627_s20   ;;  %s2541_s15 = smov %s1611_s16 }
 0x187   : > { %p15_p5 = scmp.ge.s32.totalorder %s18_s20, 4   ;;  %s2542_s16 = smov %s1615_s17 }
 0x188   : > { %s2543_s17 = smov %s1711_s28  ;;  %s2544_s18 = smov %s1623_s19 }
 0x189   : > { %s2545_s19 = smov %s2547_s23  ;;  %17 = sbr.rel (!%p15_p5) target bundleno = 4 (0x4), region = 87 }
 0x190   :  { %1113 = vsyncpa [#allocation4], 1 }
 0x191   :  { %1115 = vsyncpa [#allocation4 + $0x1], 1 }

</bundles_post_ra>
